<compile_context>
chip_gen: v7x
topology: tpu7x:2x2x1
jax: 0.10.0
libtpu: 0.0.40
codegen_flags: <defaults>
</compile_context>

<pallas_src>
import jax
import jax.numpy as jnp
from jax.experimental import pallas as pl
from jax.experimental.pallas import tpu as pltpu

K = 7      # temporal kernel width of the first two convs
PAD = 3    # 'same' padding


def jwnet_kernel(x_ref, w1_ref, w2_ref, w3_ref, p_ref, out_ref):
    B, T, Cin = x_ref.shape
    Henc = w1_ref.shape[2]
    Hdec = w2_ref.shape[2]
    BT = B * T

    # Consolidated small params: rows = [b1, b2, b3, w4, b4] (f32, lane-padded to Hmax).
    p = p_ref[...]
    b1 = p[0:1, 0:Henc]                          # (1, Henc)
    b2 = p[1:2, 0:Hdec]                          # (1, Hdec)
    b3 = p[2:3, 0:Hdec]                          # (1, Hdec)
    w4 = p[3:4, 0:Hdec].reshape(1, 1, Hdec)      # (1, 1, Hdec)
    b4 = p[4:5, 0:1]                             # (1, 1)

    # --- Conv1d(Cin, Henc, 7, padding=3): per-tap matmul accumulation (f32 acc) ---
    x = x_ref[...].astype(jnp.bfloat16)
    zx = jnp.zeros((B, PAD, Cin), jnp.bfloat16)
    xp = jnp.concatenate([zx, x, zx], axis=1)                      # (B, T+6, Cin)
    h1 = jnp.zeros((BT, Henc), jnp.float32)
    for k in range(K):                                             # static sublane shifts
        h1 = h1 + jnp.dot(xp[:, k:k + T, :].reshape(BT, Cin), w1_ref[k],
                          preferred_element_type=jnp.float32)
    h1 = jnp.maximum(h1 + b1, 0.0)                                 # ReLU; Dropout = identity

    # --- Conv1d(Henc, Hdec, 7, padding=3): per-tap matmul accumulation ---
    h1b = h1.reshape(B, T, Henc).astype(jnp.bfloat16)
    zh = jnp.zeros((B, PAD, Henc), jnp.bfloat16)
    h1p = jnp.concatenate([zh, h1b, zh], axis=1)                   # (B, T+6, Henc)
    h2 = jnp.zeros((BT, Hdec), jnp.float32)
    for k in range(K):
        h2 = h2 + jnp.dot(h1p[:, k:k + T, :].reshape(BT, Henc), w2_ref[k],
                          preferred_element_type=jnp.float32)
    h2 = jnp.maximum(h2 + b2, 0.0)                                 # ReLU; Dropout = identity

    # --- Conv1d(Hdec, Hdec, 1): plain matmul ---
    h3 = jnp.dot(h2.astype(jnp.bfloat16), w3_ref[...],
                 preferred_element_type=jnp.float32)
    h3 = jnp.maximum(h3 + b3, 0.0)                                 # ReLU; Dropout = identity

    # --- Conv1d(Hdec, 1, 1): VPU multiply + channel (lane) reduce -> lane-dense (B, T) ---
    y = jnp.sum(h3.reshape(B, T, Hdec) * w4, axis=-1) + b4         # (B, T)
    out_ref[...] = y


def prepare_params(w1, b1, w2, b2, w3, b3, w4, b4):
    """One-time (non-jitted per call) weight packing: bf16 casts hoisted off the hot path."""
    Henc = w1.shape[2]
    Hdec = w2.shape[2]
    Hmax = max(Henc, Hdec)

    def row(v):
        v = jnp.asarray(v, jnp.float32).reshape(-1)
        return jnp.pad(v, (0, Hmax - v.shape[0]))

    params = jnp.stack([row(b1), row(b2), row(b3), row(w4),
                        row(jnp.reshape(b4, (1,)))])               # (5, Hmax) f32
    return (w1.astype(jnp.bfloat16),     # (K, Cin, Henc)
            w2.astype(jnp.bfloat16),     # (K, Henc, Hdec)
            w3.astype(jnp.bfloat16),     # (Hdec, Hdec)
            params)


@jax.jit
def jwnet_forward(x, w1b, w2b, w3b, params):
    B, T, Cin = x.shape
    Henc = w1b.shape[2]
    Hdec = w2b.shape[2]
    Hmax = params.shape[1]

    # One grid step covers the whole (tiny) problem.  At production sizes, tile B (or
    # B*T) to MXU height (128/256) here, keep the weight/param index maps constant so
    # they stay resident, and mark the row axis "parallel" (engages both v7x TCs).
    out = pl.pallas_call(
        jwnet_kernel,
        out_shape=jax.ShapeDtypeStruct((B, T), jnp.float32),
        grid_spec=pltpu.PrefetchScalarGridSpec(
            num_scalar_prefetch=0,
            grid=(1,),
            in_specs=[
                pl.BlockSpec((B, T, Cin), lambda i: (0, 0, 0)),        # raw x (no im2col)
                pl.BlockSpec((K, Cin, Henc), lambda i: (0, 0, 0)),     # w1 taps (bf16)
                pl.BlockSpec((K, Henc, Hdec), lambda i: (0, 0, 0)),    # w2 taps (bf16)
                pl.BlockSpec((Hdec, Hdec), lambda i: (0, 0)),          # w3 (1x1, bf16)
                pl.BlockSpec((5, Hmax), lambda i: (0, 0)),             # [b1,b2,b3,w4,b4] f32
            ],
            out_specs=pl.BlockSpec((B, T), lambda i: (0, 0)),          # lane-dense output
        ),
        compiler_params=pltpu.CompilerParams(
            dimension_semantics=("arbitrary",)),
    )(x, w1b, w2b, w3b, params)

    return out   # torch .squeeze(): (B, 1, T) -> (B, T)


def jwnet_reference(x, w1, b1, w2, b2, w3, b3, w4, b4):
    """Pure-JAX reference with the same bf16-operand / f32-accumulate semantics."""
    B, T, _ = x.shape

    def conv7(h, w, bias):  # h: (B, T, Ci) f32, w: (K, Ci, Co) f32
        hp = jnp.pad(h, ((0, 0), (PAD, PAD), (0, 0))).astype(jnp.bfloat16)
        wb = w.astype(jnp.bfloat16)
        acc = jnp.zeros((B, T, w.shape[2]), jnp.float32)
        for k in range(K):
            acc = acc + jnp.einsum('btc,cd->btd', hp[:, k:k + T, :], wb[k],
                                   preferred_element_type=jnp.float32)
        return acc + bias

    h = jax.nn.relu(conv7(x, w1, b1))
    h = jax.nn.relu(conv7(h, w2, b2))
    h = jax.nn.relu(jnp.einsum('btc,cd->btd', h.astype(jnp.bfloat16),
                               w3.astype(jnp.bfloat16),
                               preferred_element_type=jnp.float32) + b3)
    y = jnp.einsum('btc,c->bt', h, w4) + b4
    return y


if __name__ == "__main__":
    # Small, module-consistent sizes: FEATURE_DIM_1=8, ENCODER_HIDDEN=32,
    # DECODER_HIDDEN=32, batch=2, seq=16.
    B, T, Cin, Henc, Hdec = 2, 16, 8, 32, 32

    key = jax.random.PRNGKey(0)
    kx, k1, k2, k3, k4, kb1, kb2, kb3, kb4 = jax.random.split(key, 9)

    x = jax.random.normal(kx, (B, T, Cin), jnp.float32)

    # Conv1d weights stored as (kernel_tap, C_in, C_out)  [= torch (Co, Ci, K) transposed]
    w1 = jax.random.normal(k1, (K, Cin, Henc), jnp.float32) * 0.1
    b1 = jax.random.normal(kb1, (Henc,), jnp.float32) * 0.1
    w2 = jax.random.normal(k2, (K, Henc, Hdec), jnp.float32) * 0.1
    b2 = jax.random.normal(kb2, (Hdec,), jnp.float32) * 0.1
    w3 = jax.random.normal(k3, (Hdec, Hdec), jnp.float32) * 0.1
    b3 = jax.random.normal(kb3, (Hdec,), jnp.float32) * 0.1
    w4 = jax.random.normal(k4, (Hdec,), jnp.float32) * 0.1
    b4 = jax.random.normal(kb4, (), jnp.float32) * 0.1

    # One-time weight packing (bf16 casts + bias/w4 consolidation) outside the hot path.
    w1b, w2b, w3b, params = prepare_params(w1, b1, w2, b2, w3, b3, w4, b4)
    w1b, w2b, w3b, params = jax.block_until_ready((w1b, w2b, w3b, params))

    out = jwnet_forward(x, w1b, w2b, w3b, params)
    out = jax.block_until_ready(out)

    ref = jwnet_reference(x, w1, b1, w2, b2, w3, b3, w4, b4)
    assert out.shape == (B, T), out.shape
    assert jnp.allclose(out, ref, atol=1e-2, rtol=1e-2), \
        float(jnp.max(jnp.abs(out - ref)))

    print("KERNEL_OK")
</pallas_src>

<mosaic_0001>
module attributes {stable_mosaic.version = 11 : i64} {
  func.func @jwnet_kernel(%arg0: i32, %arg1: memref<2x16x8xf32, #tpu.memory_space<vmem>>, %arg2: memref<7x8x32xbf16, #tpu.memory_space<vmem>>, %arg3: memref<7x32x32xbf16, #tpu.memory_space<vmem>>, %arg4: memref<32x32xbf16, #tpu.memory_space<vmem>>, %arg5: memref<5x32xf32, #tpu.memory_space<vmem>>, %arg6: memref<2x16xf32, #tpu.memory_space<vmem>>) attributes {dimension_semantics = [#tpu.dimension_semantics<arbitrary>], iteration_bounds = array<i64: 1>, scalar_prefetch = 0 : i64, scratch_operands = 0 : i64, tpu.core_type = #tpu.core_type<tc>, window_params = [{pipeline_mode = #tpu.pipeline_mode<synchronous>, transform_indices = @transform_0, window_bounds = array<i64: 2, 16, 8>}, {pipeline_mode = #tpu.pipeline_mode<synchronous>, transform_indices = @transform_1, window_bounds = array<i64: 7, 8, 32>}, {pipeline_mode = #tpu.pipeline_mode<synchronous>, transform_indices = @transform_2, window_bounds = array<i64: 7, 32, 32>}, {pipeline_mode = #tpu.pipeline_mode<synchronous>, transform_indices = @transform_3, window_bounds = array<i64: 32, 32>}, {pipeline_mode = #tpu.pipeline_mode<synchronous>, transform_indices = @transform_4, window_bounds = array<i64: 5, 32>}, {pipeline_mode = #tpu.pipeline_mode<synchronous>, transform_indices = @transform_5, window_bounds = array<i64: 2, 16>}]} {
    %c0 = arith.constant 0 : index
    %c0_0 = arith.constant 0 : index
    %0 = vector.load %arg5[%c0, %c0_0] : memref<5x32xf32, #tpu.memory_space<vmem>>, vector<5x32xf32>
    %1 = vector.extract_strided_slice %0 {offsets = [0, 0], sizes = [1, 32], strides = [1, 1]} : vector<5x32xf32> to vector<1x32xf32>
    %2 = vector.extract_strided_slice %0 {offsets = [1, 0], sizes = [1, 32], strides = [1, 1]} : vector<5x32xf32> to vector<1x32xf32>
    %3 = vector.extract_strided_slice %0 {offsets = [2, 0], sizes = [1, 32], strides = [1, 1]} : vector<5x32xf32> to vector<1x32xf32>
    %4 = vector.extract_strided_slice %0 {offsets = [3, 0], sizes = [1, 32], strides = [1, 1]} : vector<5x32xf32> to vector<1x32xf32>
    %5 = vector.shape_cast %4 : vector<1x32xf32> to vector<1x1x32xf32>
    %6 = vector.extract_strided_slice %0 {offsets = [4, 0], sizes = [1, 1], strides = [1, 1]} : vector<5x32xf32> to vector<1x1xf32>
    %c0_1 = arith.constant 0 : index
    %c0_2 = arith.constant 0 : index
    %c0_3 = arith.constant 0 : index
    %7 = vector.load %arg1[%c0_1, %c0_2, %c0_3] : memref<2x16x8xf32, #tpu.memory_space<vmem>>, vector<2x16x8xf32>
    %8 = arith.truncf %7 : vector<2x16x8xf32> to vector<2x16x8xbf16>
    %cst = arith.constant 0.000000e+00 : bf16
    %9 = vector.broadcast %cst : bf16 to vector<2x3x8xbf16>
    %10 = tpu.concatenate %9, %8, %9 in 1 : vector<2x3x8xbf16>, vector<2x16x8xbf16>, vector<2x3x8xbf16> -> vector<2x22x8xbf16>
    %cst_4 = arith.constant 0.000000e+00 : f32
    %11 = vector.broadcast %cst_4 : f32 to vector<32x32xf32>
    %12 = vector.extract_strided_slice %10 {offsets = [0, 0, 0], sizes = [2, 16, 8], strides = [1, 1, 1]} : vector<2x22x8xbf16> to vector<2x16x8xbf16>
    %13 = vector.shape_cast %12 : vector<2x16x8xbf16> to vector<32x8xbf16>
    %c0_5 = arith.constant 0 : index
    %c0_6 = arith.constant 0 : index
    %c0_7 = arith.constant 0 : index
    %14 = vector.load %arg2[%c0_5, %c0_6, %c0_7] : memref<7x8x32xbf16, #tpu.memory_space<vmem>>, vector<1x8x32xbf16>
    %15 = vector.shape_cast %14 : vector<1x8x32xbf16> to vector<8x32xbf16>
    %cst_8 = arith.constant dense<0.000000e+00> : vector<32x32xf32>
    %16 = tpu.matmul %13, %15, %cst_8 {dimension_numbers = #tpu.dot_dimension_numbers<[1], [0], [0], [1], [0, 0, 1, 1], [], []>} : vector<32x8xbf16>, vector<8x32xbf16>, vector<32x32xf32> -> vector<32x32xf32>
    %17 = arith.addf %11, %16 : vector<32x32xf32>
    %18 = vector.extract_strided_slice %10 {offsets = [0, 1, 0], sizes = [2, 16, 8], strides = [1, 1, 1]} : vector<2x22x8xbf16> to vector<2x16x8xbf16>
    %19 = vector.shape_cast %18 : vector<2x16x8xbf16> to vector<32x8xbf16>
    %c1 = arith.constant 1 : index
    %c0_9 = arith.constant 0 : index
    %c0_10 = arith.constant 0 : index
    %20 = vector.load %arg2[%c1, %c0_9, %c0_10] : memref<7x8x32xbf16, #tpu.memory_space<vmem>>, vector<1x8x32xbf16>
    %21 = vector.shape_cast %20 : vector<1x8x32xbf16> to vector<8x32xbf16>
    %cst_11 = arith.constant dense<0.000000e+00> : vector<32x32xf32>
    %22 = tpu.matmul %19, %21, %cst_11 {dimension_numbers = #tpu.dot_dimension_numbers<[1], [0], [0], [1], [0, 0, 1, 1], [], []>} : vector<32x8xbf16>, vector<8x32xbf16>, vector<32x32xf32> -> vector<32x32xf32>
    %23 = arith.addf %17, %22 : vector<32x32xf32>
    %24 = vector.extract_strided_slice %10 {offsets = [0, 2, 0], sizes = [2, 16, 8], strides = [1, 1, 1]} : vector<2x22x8xbf16> to vector<2x16x8xbf16>
    %25 = vector.shape_cast %24 : vector<2x16x8xbf16> to vector<32x8xbf16>
    %c2 = arith.constant 2 : index
    %c0_12 = arith.constant 0 : index
    %c0_13 = arith.constant 0 : index
    %26 = vector.load %arg2[%c2, %c0_12, %c0_13] : memref<7x8x32xbf16, #tpu.memory_space<vmem>>, vector<1x8x32xbf16>
    %27 = vector.shape_cast %26 : vector<1x8x32xbf16> to vector<8x32xbf16>
    %cst_14 = arith.constant dense<0.000000e+00> : vector<32x32xf32>
    %28 = tpu.matmul %25, %27, %cst_14 {dimension_numbers = #tpu.dot_dimension_numbers<[1], [0], [0], [1], [0, 0, 1, 1], [], []>} : vector<32x8xbf16>, vector<8x32xbf16>, vector<32x32xf32> -> vector<32x32xf32>
    %29 = arith.addf %23, %28 : vector<32x32xf32>
    %30 = vector.extract_strided_slice %10 {offsets = [0, 3, 0], sizes = [2, 16, 8], strides = [1, 1, 1]} : vector<2x22x8xbf16> to vector<2x16x8xbf16>
    %31 = vector.shape_cast %30 : vector<2x16x8xbf16> to vector<32x8xbf16>
    %c3 = arith.constant 3 : index
    %c0_15 = arith.constant 0 : index
    %c0_16 = arith.constant 0 : index
    %32 = vector.load %arg2[%c3, %c0_15, %c0_16] : memref<7x8x32xbf16, #tpu.memory_space<vmem>>, vector<1x8x32xbf16>
    %33 = vector.shape_cast %32 : vector<1x8x32xbf16> to vector<8x32xbf16>
    %cst_17 = arith.constant dense<0.000000e+00> : vector<32x32xf32>
    %34 = tpu.matmul %31, %33, %cst_17 {dimension_numbers = #tpu.dot_dimension_numbers<[1], [0], [0], [1], [0, 0, 1, 1], [], []>} : vector<32x8xbf16>, vector<8x32xbf16>, vector<32x32xf32> -> vector<32x32xf32>
    %35 = arith.addf %29, %34 : vector<32x32xf32>
    %36 = vector.extract_strided_slice %10 {offsets = [0, 4, 0], sizes = [2, 16, 8], strides = [1, 1, 1]} : vector<2x22x8xbf16> to vector<2x16x8xbf16>
    %37 = vector.shape_cast %36 : vector<2x16x8xbf16> to vector<32x8xbf16>
    %c4 = arith.constant 4 : index
    %c0_18 = arith.constant 0 : index
    %c0_19 = arith.constant 0 : index
    %38 = vector.load %arg2[%c4, %c0_18, %c0_19] : memref<7x8x32xbf16, #tpu.memory_space<vmem>>, vector<1x8x32xbf16>
    %39 = vector.shape_cast %38 : vector<1x8x32xbf16> to vector<8x32xbf16>
    %cst_20 = arith.constant dense<0.000000e+00> : vector<32x32xf32>
    %40 = tpu.matmul %37, %39, %cst_20 {dimension_numbers = #tpu.dot_dimension_numbers<[1], [0], [0], [1], [0, 0, 1, 1], [], []>} : vector<32x8xbf16>, vector<8x32xbf16>, vector<32x32xf32> -> vector<32x32xf32>
    %41 = arith.addf %35, %40 : vector<32x32xf32>
    %42 = vector.extract_strided_slice %10 {offsets = [0, 5, 0], sizes = [2, 16, 8], strides = [1, 1, 1]} : vector<2x22x8xbf16> to vector<2x16x8xbf16>
    %43 = vector.shape_cast %42 : vector<2x16x8xbf16> to vector<32x8xbf16>
    %c5 = arith.constant 5 : index
    %c0_21 = arith.constant 0 : index
    %c0_22 = arith.constant 0 : index
    %44 = vector.load %arg2[%c5, %c0_21, %c0_22] : memref<7x8x32xbf16, #tpu.memory_space<vmem>>, vector<1x8x32xbf16>
    %45 = vector.shape_cast %44 : vector<1x8x32xbf16> to vector<8x32xbf16>
    %cst_23 = arith.constant dense<0.000000e+00> : vector<32x32xf32>
    %46 = tpu.matmul %43, %45, %cst_23 {dimension_numbers = #tpu.dot_dimension_numbers<[1], [0], [0], [1], [0, 0, 1, 1], [], []>} : vector<32x8xbf16>, vector<8x32xbf16>, vector<32x32xf32> -> vector<32x32xf32>
    %47 = arith.addf %41, %46 : vector<32x32xf32>
    %48 = vector.extract_strided_slice %10 {offsets = [0, 6, 0], sizes = [2, 16, 8], strides = [1, 1, 1]} : vector<2x22x8xbf16> to vector<2x16x8xbf16>
    %49 = vector.shape_cast %48 : vector<2x16x8xbf16> to vector<32x8xbf16>
    %c6 = arith.constant 6 : index
    %c0_24 = arith.constant 0 : index
    %c0_25 = arith.constant 0 : index
    %50 = vector.load %arg2[%c6, %c0_24, %c0_25] : memref<7x8x32xbf16, #tpu.memory_space<vmem>>, vector<1x8x32xbf16>
    %51 = vector.shape_cast %50 : vector<1x8x32xbf16> to vector<8x32xbf16>
    %cst_26 = arith.constant dense<0.000000e+00> : vector<32x32xf32>
    %52 = tpu.matmul %49, %51, %cst_26 {dimension_numbers = #tpu.dot_dimension_numbers<[1], [0], [0], [1], [0, 0, 1, 1], [], []>} : vector<32x8xbf16>, vector<8x32xbf16>, vector<32x32xf32> -> vector<32x32xf32>
    %53 = arith.addf %47, %52 : vector<32x32xf32>
    %54 = vector.broadcast %1 : vector<1x32xf32> to vector<32x32xf32>
    %55 = arith.addf %53, %54 : vector<32x32xf32>
    %cst_27 = arith.constant 0.000000e+00 : f32
    %56 = vector.broadcast %cst_27 : f32 to vector<32x32xf32>
    %57 = arith.maximumf %55, %56 : vector<32x32xf32>
    %58 = vector.shape_cast %57 : vector<32x32xf32> to vector<2x16x32xf32>
    %59 = arith.truncf %58 : vector<2x16x32xf32> to vector<2x16x32xbf16>
    %cst_28 = arith.constant 0.000000e+00 : bf16
    %60 = vector.broadcast %cst_28 : bf16 to vector<2x3x32xbf16>
    %61 = tpu.concatenate %60, %59, %60 in 1 : vector<2x3x32xbf16>, vector<2x16x32xbf16>, vector<2x3x32xbf16> -> vector<2x22x32xbf16>
    %cst_29 = arith.constant 0.000000e+00 : f32
    %62 = vector.broadcast %cst_29 : f32 to vector<32x32xf32>
    %63 = vector.extract_strided_slice %61 {offsets = [0, 0, 0], sizes = [2, 16, 32], strides = [1, 1, 1]} : vector<2x22x32xbf16> to vector<2x16x32xbf16>
    %64 = vector.shape_cast %63 : vector<2x16x32xbf16> to vector<32x32xbf16>
    %c0_30 = arith.constant 0 : index
    %c0_31 = arith.constant 0 : index
    %c0_32 = arith.constant 0 : index
    %65 = vector.load %arg3[%c0_30, %c0_31, %c0_32] : memref<7x32x32xbf16, #tpu.memory_space<vmem>>, vector<1x32x32xbf16>
    %66 = vector.shape_cast %65 : vector<1x32x32xbf16> to vector<32x32xbf16>
    %cst_33 = arith.constant dense<0.000000e+00> : vector<32x32xf32>
    %67 = tpu.matmul %64, %66, %cst_33 {dimension_numbers = #tpu.dot_dimension_numbers<[1], [0], [0], [1], [0, 0, 1, 1], [], []>} : vector<32x32xbf16>, vector<32x32xbf16>, vector<32x32xf32> -> vector<32x32xf32>
    %68 = arith.addf %62, %67 : vector<32x32xf32>
    %69 = vector.extract_strided_slice %61 {offsets = [0, 1, 0], sizes = [2, 16, 32], strides = [1, 1, 1]} : vector<2x22x32xbf16> to vector<2x16x32xbf16>
    %70 = vector.shape_cast %69 : vector<2x16x32xbf16> to vector<32x32xbf16>
    %c1_34 = arith.constant 1 : index
    %c0_35 = arith.constant 0 : index
    %c0_36 = arith.constant 0 : index
    %71 = vector.load %arg3[%c1_34, %c0_35, %c0_36] : memref<7x32x32xbf16, #tpu.memory_space<vmem>>, vector<1x32x32xbf16>
    %72 = vector.shape_cast %71 : vector<1x32x32xbf16> to vector<32x32xbf16>
    %cst_37 = arith.constant dense<0.000000e+00> : vector<32x32xf32>
    %73 = tpu.matmul %70, %72, %cst_37 {dimension_numbers = #tpu.dot_dimension_numbers<[1], [0], [0], [1], [0, 0, 1, 1], [], []>} : vector<32x32xbf16>, vector<32x32xbf16>, vector<32x32xf32> -> vector<32x32xf32>
    %74 = arith.addf %68, %73 : vector<32x32xf32>
    %75 = vector.extract_strided_slice %61 {offsets = [0, 2, 0], sizes = [2, 16, 32], strides = [1, 1, 1]} : vector<2x22x32xbf16> to vector<2x16x32xbf16>
    %76 = vector.shape_cast %75 : vector<2x16x32xbf16> to vector<32x32xbf16>
    %c2_38 = arith.constant 2 : index
    %c0_39 = arith.constant 0 : index
    %c0_40 = arith.constant 0 : index
    %77 = vector.load %arg3[%c2_38, %c0_39, %c0_40] : memref<7x32x32xbf16, #tpu.memory_space<vmem>>, vector<1x32x32xbf16>
    %78 = vector.shape_cast %77 : vector<1x32x32xbf16> to vector<32x32xbf16>
    %cst_41 = arith.constant dense<0.000000e+00> : vector<32x32xf32>
    %79 = tpu.matmul %76, %78, %cst_41 {dimension_numbers = #tpu.dot_dimension_numbers<[1], [0], [0], [1], [0, 0, 1, 1], [], []>} : vector<32x32xbf16>, vector<32x32xbf16>, vector<32x32xf32> -> vector<32x32xf32>
    %80 = arith.addf %74, %79 : vector<32x32xf32>
    %81 = vector.extract_strided_slice %61 {offsets = [0, 3, 0], sizes = [2, 16, 32], strides = [1, 1, 1]} : vector<2x22x32xbf16> to vector<2x16x32xbf16>
    %82 = vector.shape_cast %81 : vector<2x16x32xbf16> to vector<32x32xbf16>
    %c3_42 = arith.constant 3 : index
    %c0_43 = arith.constant 0 : index
    %c0_44 = arith.constant 0 : index
    %83 = vector.load %arg3[%c3_42, %c0_43, %c0_44] : memref<7x32x32xbf16, #tpu.memory_space<vmem>>, vector<1x32x32xbf16>
    %84 = vector.shape_cast %83 : vector<1x32x32xbf16> to vector<32x32xbf16>
    %cst_45 = arith.constant dense<0.000000e+00> : vector<32x32xf32>
    %85 = tpu.matmul %82, %84, %cst_45 {dimension_numbers = #tpu.dot_dimension_numbers<[1], [0], [0], [1], [0, 0, 1, 1], [], []>} : vector<32x32xbf16>, vector<32x32xbf16>, vector<32x32xf32> -> vector<32x32xf32>
    %86 = arith.addf %80, %85 : vector<32x32xf32>
    %87 = vector.extract_strided_slice %61 {offsets = [0, 4, 0], sizes = [2, 16, 32], strides = [1, 1, 1]} : vector<2x22x32xbf16> to vector<2x16x32xbf16>
    %88 = vector.shape_cast %87 : vector<2x16x32xbf16> to vector<32x32xbf16>
    %c4_46 = arith.constant 4 : index
    %c0_47 = arith.constant 0 : index
    %c0_48 = arith.constant 0 : index
    %89 = vector.load %arg3[%c4_46, %c0_47, %c0_48] : memref<7x32x32xbf16, #tpu.memory_space<vmem>>, vector<1x32x32xbf16>
    %90 = vector.shape_cast %89 : vector<1x32x32xbf16> to vector<32x32xbf16>
    %cst_49 = arith.constant dense<0.000000e+00> : vector<32x32xf32>
    %91 = tpu.matmul %88, %90, %cst_49 {dimension_numbers = #tpu.dot_dimension_numbers<[1], [0], [0], [1], [0, 0, 1, 1], [], []>} : vector<32x32xbf16>, vector<32x32xbf16>, vector<32x32xf32> -> vector<32x32xf32>
    %92 = arith.addf %86, %91 : vector<32x32xf32>
    %93 = vector.extract_strided_slice %61 {offsets = [0, 5, 0], sizes = [2, 16, 32], strides = [1, 1, 1]} : vector<2x22x32xbf16> to vector<2x16x32xbf16>
    %94 = vector.shape_cast %93 : vector<2x16x32xbf16> to vector<32x32xbf16>
    %c5_50 = arith.constant 5 : index
    %c0_51 = arith.constant 0 : index
    %c0_52 = arith.constant 0 : index
    %95 = vector.load %arg3[%c5_50, %c0_51, %c0_52] : memref<7x32x32xbf16, #tpu.memory_space<vmem>>, vector<1x32x32xbf16>
    %96 = vector.shape_cast %95 : vector<1x32x32xbf16> to vector<32x32xbf16>
    %cst_53 = arith.constant dense<0.000000e+00> : vector<32x32xf32>
    %97 = tpu.matmul %94, %96, %cst_53 {dimension_numbers = #tpu.dot_dimension_numbers<[1], [0], [0], [1], [0, 0, 1, 1], [], []>} : vector<32x32xbf16>, vector<32x32xbf16>, vector<32x32xf32> -> vector<32x32xf32>
    %98 = arith.addf %92, %97 : vector<32x32xf32>
    %99 = vector.extract_strided_slice %61 {offsets = [0, 6, 0], sizes = [2, 16, 32], strides = [1, 1, 1]} : vector<2x22x32xbf16> to vector<2x16x32xbf16>
    %100 = vector.shape_cast %99 : vector<2x16x32xbf16> to vector<32x32xbf16>
    %c6_54 = arith.constant 6 : index
    %c0_55 = arith.constant 0 : index
    %c0_56 = arith.constant 0 : index
    %101 = vector.load %arg3[%c6_54, %c0_55, %c0_56] : memref<7x32x32xbf16, #tpu.memory_space<vmem>>, vector<1x32x32xbf16>
    %102 = vector.shape_cast %101 : vector<1x32x32xbf16> to vector<32x32xbf16>
    %cst_57 = arith.constant dense<0.000000e+00> : vector<32x32xf32>
    %103 = tpu.matmul %100, %102, %cst_57 {dimension_numbers = #tpu.dot_dimension_numbers<[1], [0], [0], [1], [0, 0, 1, 1], [], []>} : vector<32x32xbf16>, vector<32x32xbf16>, vector<32x32xf32> -> vector<32x32xf32>
    %104 = arith.addf %98, %103 : vector<32x32xf32>
    %105 = vector.broadcast %2 : vector<1x32xf32> to vector<32x32xf32>
    %106 = arith.addf %104, %105 : vector<32x32xf32>
    %cst_58 = arith.constant 0.000000e+00 : f32
    %107 = vector.broadcast %cst_58 : f32 to vector<32x32xf32>
    %108 = arith.maximumf %106, %107 : vector<32x32xf32>
    %109 = arith.truncf %108 : vector<32x32xf32> to vector<32x32xbf16>
    %c0_59 = arith.constant 0 : index
    %c0_60 = arith.constant 0 : index
    %110 = vector.load %arg4[%c0_59, %c0_60] : memref<32x32xbf16, #tpu.memory_space<vmem>>, vector<32x32xbf16>
    %cst_61 = arith.constant dense<0.000000e+00> : vector<32x32xf32>
    %111 = tpu.matmul %109, %110, %cst_61 {dimension_numbers = #tpu.dot_dimension_numbers<[1], [0], [0], [1], [0, 0, 1, 1], [], []>} : vector<32x32xbf16>, vector<32x32xbf16>, vector<32x32xf32> -> vector<32x32xf32>
    %112 = vector.broadcast %3 : vector<1x32xf32> to vector<32x32xf32>
    %113 = arith.addf %111, %112 : vector<32x32xf32>
    %cst_62 = arith.constant 0.000000e+00 : f32
    %114 = vector.broadcast %cst_62 : f32 to vector<32x32xf32>
    %115 = arith.maximumf %113, %114 : vector<32x32xf32>
    %116 = vector.shape_cast %115 : vector<32x32xf32> to vector<2x16x32xf32>
    %117 = vector.broadcast %5 : vector<1x1x32xf32> to vector<2x16x32xf32>
    %118 = arith.mulf %116, %117 : vector<2x16x32xf32>
    %cst_63 = arith.constant dense<0.000000e+00> : vector<2x16xf32>
    %119 = vector.multi_reduction <add>, %118, %cst_63 [2] : vector<2x16x32xf32> to vector<2x16xf32>
    %120 = vector.broadcast %6 : vector<1x1xf32> to vector<2x16xf32>
    %121 = arith.addf %119, %120 : vector<2x16xf32>
    %c0_64 = arith.constant 0 : index
    %c0_65 = arith.constant 0 : index
    %122 = vector.load %arg6[%c0_64, %c0_65] : memref<2x16xf32, #tpu.memory_space<vmem>>, vector<2x16xf32>
    tpu.vector_store %arg6[%c0_64, %c0_65], %121 {strides = array<i32>} : memref<2x16xf32, #tpu.memory_space<vmem>>, vector<2x16xf32>,
    return
  }
  func.func @transform_0(%arg0: i32) -> (i32, i32, i32) {
    %c0_i32 = arith.constant 0 : i32
    %c0_i32_0 = arith.constant 0 : i32
    %c0_i32_1 = arith.constant 0 : i32
    %c0_i32_2 = arith.constant 0 : i32
    return %c0_i32, %c0_i32_0, %c0_i32_1 : i32, i32, i32
  }
  func.func @transform_1(%arg0: i32) -> (i32, i32, i32) {
    %c0_i32 = arith.constant 0 : i32
    %c0_i32_0 = arith.constant 0 : i32
    %c0_i32_1 = arith.constant 0 : i32
    %c0_i32_2 = arith.constant 0 : i32
    return %c0_i32, %c0_i32_0, %c0_i32_1 : i32, i32, i32
  }
  func.func @transform_2(%arg0: i32) -> (i32, i32, i32) {
    %c0_i32 = arith.constant 0 : i32
    %c0_i32_0 = arith.constant 0 : i32
    %c0_i32_1 = arith.constant 0 : i32
    %c0_i32_2 = arith.constant 0 : i32
    return %c0_i32, %c0_i32_0, %c0_i32_1 : i32, i32, i32
  }
  func.func @transform_3(%arg0: i32) -> (i32, i32) {
    %c0_i32 = arith.constant 0 : i32
    %c0_i32_0 = arith.constant 0 : i32
    %c0_i32_1 = arith.constant 0 : i32
    return %c0_i32, %c0_i32_0 : i32, i32
  }
  func.func @transform_4(%arg0: i32) -> (i32, i32) {
    %c0_i32 = arith.constant 0 : i32
    %c0_i32_0 = arith.constant 0 : i32
    %c0_i32_1 = arith.constant 0 : i32
    return %c0_i32, %c0_i32_0 : i32, i32
  }
  func.func @transform_5(%arg0: i32) -> (i32, i32) {
    %c0_i32 = arith.constant 0 : i32
    %c0_i32_0 = arith.constant 0 : i32
    %c0_i32_1 = arith.constant 0 : i32
    return %c0_i32, %c0_i32_0 : i32, i32
  }
}

</mosaic_0001>

<bundles_post_ra>
// kernel: jwnet_forward.1
= control target key start
LH: loop header
LB: loop body
LE: loop exit
PB: predicated region body
PF: predicated region fallthrough
CT: control target
= control target key end

     0   :  { %10 = vsyncpa [#allocation3], 0  ;;  %s2072_s0 = inlined_call_operand.vmem [shape: f32[2,16,8], index: 0, kind: input, shape index: {}]   ;;  %s2073_s1 = inlined_call_operand.vmem [shape: bf16[7,8,32], index: 1, kind: input, shape index: {}]   ;;  %s2074_s2 = inlined_call_operand.hbm [shape: bf16[7,32,32], index: 2, kind: input, shape index: {}]   ;;  %s2075_s3 = inlined_call_operand.vmem [shape: bf16[32,32], index: 3, kind: input, shape index: {}]   ;;  %s2076_s4 = inlined_call_operand.vmem [shape: f32[5,32], index: 4, kind: input, shape index: {}]   ;;  %s2077_s5 = inlined_call_operand.hbm [shape: f32[2,16], index: 5, kind: output, shape index: {}]  }
   0x1   :  { %11 = vsyncpa [#allocation4], 0  ;;  %s1731_s18 = smov [#allocation2]   ;;  %s1683_s22 = scalar_lea.hbm %s2074_s2, 1792 }
   0x2   :  { %s21_s19 = sshll.u32 %s1731_s18, 4  ;;  %p1684_p0 = scmp.ne.s32.totalorder %s2074_s2, %s1683_s22  ;;  %s22_s19 = int_to_ptr.vmem [resolvable:$true] %s21_s19 }
   0x3   :  { %p1687_p1 = scmp.lt.u32.totalorder %s1683_s22, %s2074_s2 }
   0x5   :  { %p1689_p2 = pnand %p1687_p1, %p1684_p0 }
   0x7   :  { %1692 = shalt.err (!%p1689_p2)
}
   0x8   :  { %s1693_s27 = scalar_lea.vmem %s22_s19, 1792  ;;  %p1698_p4 = scmp.lt.s32.totalorder %s22_s19, %s22_s19 }
   0x9   :  { %p1694_p3 = scmp.ne.s32.totalorder %s22_s19, %s1693_s27  ;;  %p1699_p5 = scmp.lt.s32.totalorder %s1693_s27, %s1693_s27 }
   0xb   :  { %p1700_p6 = por %p1699_p5, %p1698_p4 }
   0xd   :  { %p1701_p7 = pnand %p1700_p6, %p1694_p3 }
   0xf   :  { %1704 = shalt.err (!%p1701_p7)
}
  0x10   :  { %s1732_s28 = smov 64   ;;  %s1733_s29 = smov 4  }
  0x11   :  { %27 = dma.hbm_to_vmem [thread:$0]  %s2074_s2, 1792, %s22_s19, [#allocation3], %s1732_s28, %s1732_s28, %s1733_s29  }
  0x12   :  { %1727 = dma.done.wait [#allocation3], 1792  }
  0x13   :  { %1728 = vsyncadd [#allocation3], 4294965504  ;;  %vm103_vm0 = vcmask 1043456   ;;  %v1395_v0 = vld [vmem:[%s2073_s1 + $0x4] sm:$0xf]  ;;  %v38_v2 = vld [vmem:[%s2072_s0 + $0x8] sm:$0xff] }
  0x14   :  { %v37_v1 = vld [vmem:[%s2072_s0] sm:$0xff]  ;;  %1654 = vmatprep.subr.msk.bf16.mxu0 %vm103_vm0, %v1395_v0  ;;  %v105_v3 = vsel %vm103_vm0, %v1395_v0, 0  ;;  %v39_v6 = vld [vmem:[%s2072_s0 + $0x10] sm:$0xff]  ;;  %v40_v7 = vld [vmem:[%s2072_s0 + $0x18] sm:$0xff]  ;;  %vm61_vm1 = vcmask 1041408   ;;  %vm96_vm5 = vcmask 64512  }
  0x15   :  { %v41_v4 = vpack.c.bf16 %v38_v2, %v37_v1  ;;  %v68_v5 = vld [vmem:[%s2073_s1] sm:$0xf]  ;;  %1501 = vmatpush3.bf16.msra.mxu0 %v105_v3  ;;  %v42_v8 = vpack.c.bf16 %v40_v7, %v39_v6  ;;  %vm62_vm2 = vsmask.f32 1280  ;;  %vm69_vm4 = vsmask.f32 7424 }
  0x16   :  { %1655 = vmatprep.subr.msk.bf16.mxu0 %vm103_vm0, %v68_v5  ;;  %vm1798_vm3 = vmand %vm61_vm1, %vm62_vm2  ;;  %v161_v37 = vsel %vm103_vm0, %v68_v5, 0  ;;  %v1400_v39 = vld [vmem:[%s2073_s1 + $0x8] sm:$0xf]  ;;  %vm216_vm6 = vcmask 1046528   ;;  %vm520_vm7 = vcmask 1044480   ;;  %vm370_vm9 = vcmask 1045504  }
  0x17   :  { %v44_v9 = vshrl.u32 %v41_v4, 16  ;;  %v47_v10 = vshll.u32 %v41_v4, 16  ;;  %v52_v11 = vshrl.u32 %v42_v8, 16  ;;  %v55_v12 = vshll.u32 %v42_v8, 16  ;;  %v1403_v51 = vld [vmem:[%s2073_s1 + $0xc] sm:$0xf] }
  0x18   :  { %v232_v48 = vsel %vm103_vm0, %v1400_v39, 0  ;;  %vm287_vm8 = vsmask.f32 6400  ;;  %v315_v62 = vsel %vm103_vm0, %v1403_v51, 0  ;;  %v1406_v0 = vld [vmem:[%s2073_s1 + $0x10] sm:$0xf] }
  0x19   :  { %v46_v13 = vrot.slane %v44_v9, 6  ;;  %v49_v14 = vrot.slane %v47_v10, 7  ;;  %v54_v16 = vrot.slane %v52_v11, 6  ;;  %v57_v17 = vrot.slane %v55_v12, 7  ;;  %v1409_v12 = vld [vmem:[%s2073_s1 + $0x14] sm:$0xf] }
  0x1a   :  { %v386_v10 = vsel %vm103_vm0, %v1406_v0, 0  ;;  %vm441_vm10 = vsmask.f32 5376  ;;  %vm672_vm11 = vcmask 261120   ;;  %vm1364_vm12 = vcmask 130112   ;;  %s1734_s6 = smov [#allocation5]  }
  0x1b   :  { %v50_v18 = vor.u32 %v49_v14, %v46_v13  ;;  %v58_v19 = vor.u32 %v57_v17, %v54_v16  ;;  %s1386_s7 = sshll.u32 %s1734_s6, 4  ;;  %vm1375_vm13 = vcmask 1041409   ;;  %vm1378_vm14 = vcmask 123904   ;;  %s1387_s7 = int_to_ptr.vmem [resolvable:$true] %s1386_s7 }
  0x1c   :  { %s1705_s8 = scalar_lea.vmem %s1387_s7, 32  ;;  %p1710_p9 = scmp.lt.s32.totalorder %s1387_s7, %s1387_s7 }
  0x1d   :  { %v1804_v20 = vsel %vm1798_vm3, 0, %v50_v18  ;;  %v1808_v21 = vsel %vm1798_vm3, %v50_v18, 0  ;;  %v1821_v25 = vsel %vm1798_vm3, 0, %v58_v19  ;;  %v1825_v26 = vsel %vm1798_vm3, %v58_v19, 0  ;;  %p1706_p8 = scmp.ne.s32.totalorder %s1387_s7, %s1705_s8  ;;  %p1711_p10 = scmp.lt.s32.totalorder %s1705_s8, %s1705_s8 }
  0x1e   :  { %v1811_v22 = vshrl.u32 %v1804_v20, 16  ;;  %v1814_v23 = vshll.u32 %v1804_v20, 16  ;;  %v1817_v24 = vshll.u32 %v1808_v21, 16  ;;  %v1828_v27 = vshrl.u32 %v1821_v25, 16 }
  0x1f   :  { %v1831_v28 = vshll.u32 %v1821_v25, 16  ;;  %v1836_v31 = vshll.u32 %v1825_v26, 16  ;;  %v217_v40 = vrot.slane %v1804_v20, 1  ;;  %v218_v41 = vrot.slane %v1808_v21, 1  ;;  %p1712_p11 = por %p1711_p10, %p1710_p9 }
  0x20   :  { %v75_v29 = vrot.slane %v1814_v23, 1  ;;  %v80_v30 = vrot.slane %v1817_v24, 1  ;;  %v521_v42 = vrot.slane %v1804_v20, 3  ;;  %v522_v43 = vrot.slane %v1808_v21, 3 }
  0x21   :  { %v87_v32 = vrot.slane %v1831_v28, 1  ;;  %v92_v34 = vrot.slane %v1836_v31, 1  ;;  %v524_v44 = vrot.slane %v1821_v25, 3  ;;  %v525_v45 = vrot.slane %v1825_v26, 3  ;;  %p1713_p12 = pnand %p1712_p11, %p1706_p8 }
  0x22   :  { %v76_v33 = vor.u32 %v75_v29, %v1811_v22  ;;  %v1860_v46 = vsel %vm520_vm7, %v521_v42, %v522_v43  ;;  %v219_v49 = vsel %vm216_vm6, %v217_v40, %v218_v41  ;;  %v291_v50 = vshrl.u32 %v1808_v21, 16  ;;  %v1935_v40 = vld [vmem:[%s2076_s4] sm:$0x1f] }
  0x23   :  { %v88_v35 = vor.u32 %v87_v32, %v1828_v27  ;;  %v1863_v47 = vsel %vm520_vm7, %v524_v44, %v525_v45  ;;  %v288_v52 = vrot.slane %v1811_v22, 1  ;;  %v289_v53 = vrot.slane %v1814_v23, 2 }
  0x24   :  { %v81_v36 = vsel %vm69_vm4, %v76_v33, %v80_v30  ;;  %v293_v54 = vrot.slane %v291_v50, 1  ;;  %v294_v55 = vrot.slane %v1817_v24, 2  ;;  %v220_v56 = vrot.slane %v1821_v25, 1 }
  0x25   :  { %1502 = vmatprep.mubr.msk.bf16.mxu0 %vm96_vm5, %v81_v36  ;;  %v93_v38 = vsel %vm69_vm4, %v88_v35, %v92_v34  ;;  %v221_v57 = vrot.slane %v1825_v26, 1  ;;  %v290_v58 = vor.u32 %v289_v53, %v288_v52  ;;  %v300_v61 = vshrl.u32 %v1825_v26, 16 }
  0x26   :  { %1503 = vmatmul.mubr.msk.bf16.vlgmr.msra.gmra.mrb[0].mxu0 %vm96_vm5, %v93_v38  ;;  %v295_v59 = vor.u32 %v294_v55, %v293_v54  ;;  %v297_v1 = vrot.slane %v1828_v27, 1  ;;  %v298_v2 = vrot.slane %v1831_v28, 2  ;;  %v303_v4 = vrot.slane %v1836_v31, 2 }
  0x27   :  { %1507 = vmatpush3.bf16.msra.mxu0 %v161_v37  ;;  %1508 = vmatprep.mubr.msk.bf16.mxu0 %vm96_vm5, %v1804_v20  ;;  %v222_v60 = vsel %vm216_vm6, %v220_v56, %v221_v57  ;;  %v302_v3 = vrot.slane %v300_v61, 1  ;;  %v371_v7 = vrot.slane %v1804_v20, 2  ;;  %v372_v8 = vrot.slane %v1808_v21, 2 }
  0x28   :  { %1656 = vmatprep.subr.msk.bf16.mxu0 %vm103_vm0, %v1400_v39  ;;  %v296_v63 = vsel %vm287_vm8, %v290_v58, %v295_v59  ;;  %v299_v5 = vor.u32 %v298_v2, %v297_v1  ;;  %v442_v13 = vrot.slane %v1811_v22, 2  ;;  %v443_v14 = vrot.slane %v1814_v23, 3  ;;  %v1412_v22 = vld [vmem:[%s2073_s1 + $0x18] sm:$0xf] }
  0x29   :  { %v304_v6 = vor.u32 %v303_v4, %v302_v3  ;;  %v373_v11 = vsel %vm370_vm9, %v371_v7, %v372_v8  ;;  %v445_v16 = vrot.slane %v291_v50, 2  ;;  %v446_v17 = vrot.slane %v1817_v24, 3 }
  0x2a   :  { %v374_v18 = vrot.slane %v1821_v25, 2  ;;  %v375_v19 = vrot.slane %v1825_v26, 2  ;;  %v444_v20 = vor.u32 %v443_v14, %v442_v13  ;;  %v465_v30 = vsel %vm103_vm0, %v1409_v12, 0 }
  0x2b   :  { %v305_v9 = vsel %vm287_vm8, %v299_v5, %v304_v6  ;;  %v447_v21 = vor.u32 %v446_v17, %v445_v16  ;;  %v449_v23 = vrot.slane %v1828_v27, 2  ;;  %v450_v24 = vrot.slane %v1831_v28, 3  ;;  %v1667_v27 = vld [vmem:[#allocation2 + $0x10] sm:$0xff]   ;;  %v1668_v28 = vld [vmem:[#allocation2 + $0x18] sm:$0xff]  }
  0x2c   :  { %v376_v29 = vsel %vm370_vm9, %v374_v18, %v375_v19  ;;  %v453_v26 = vrot.slane %v1836_v31, 3  ;;  %v536_v36 = vsel %vm103_vm0, %v1412_v22, 0  ;;  %1542 = vmatprep.subr.bf16.mxu1 %v1667_v27  ;;  %v1669_v31 = vld [vmem:[#allocation2] sm:$0xff]   ;;  %v591_v37 = vlaneseq  ;;  %v1670_v19 = vld [vmem:[#allocation2 + $0x8] sm:$0xff]  }
  0x2d   :  { %v448_v32 = vsel %vm441_vm10, %v444_v20, %v447_v21  ;;  %v451_v33 = vor.u32 %v450_v24, %v449_v23  ;;  %1543 = vmatpush3.bf16.msra.mxu1 %v1667_v27  ;;  %v1671_v21 = vld [vmem:[#allocation2 + $0x20] sm:$0xff]  }
  0x2e   :  { %1544 = vmatprep.subr.bf16.mxu1 %v1668_v28  ;;  %v1929_v38 = vshrl.u32 %v591_v37, 7 }
  0x30   :  { %v593_v39 = vsub.s32 0, %v1929_v38 }
  0x31   :  { %1545 = vmatpush3.bf16.msra.mxu1 %v1668_v28 }
  0x32   :  { %1509 = vmatmul.mubr.msk.bf16.vlgmr.msra.gmra.mrb[0].mxu0 %vm96_vm5, %v1821_v25  ;;  %v452_v25 = vrot.slane %v300_v61, 2  ;;  %1550 = vmatprep.subr.bf16.mxu1 %v1669_v31  ;;  %v594_v41 = vrot.slane %v1935_v40, %v593_v39 }
  0x33   :  { %1513 = vmatpush3.bf16.msra.mxu0 %v232_v48  ;;  %1514 = vmatprep.mubr.msk.bf16.mxu0 %vm96_vm5, %v219_v49 }
  0x34   :  { %1657 = vmatprep.subr.msk.bf16.mxu0 %vm103_vm0, %v1403_v51  ;;  %v454_v34 = vor.u32 %v453_v26, %v452_v25 }
  0x36   :  { %v455_v35 = vsel %vm441_vm10, %v451_v33, %v454_v34  ;;  %v1672_v33 = vld [vmem:[#allocation2 + $0x28] sm:$0xff]  }
  0x3e   :  { %1515 = vmatmul.mubr.msk.bf16.vlgmr.msra.gmra.mrb[0].mxu0 %vm96_vm5, %v222_v60 }
  0x3f   :  { %1519 = vmatpush3.bf16.msra.mxu0 %v315_v62  ;;  %1520 = vmatprep.mubr.msk.bf16.mxu0 %vm96_vm5, %v296_v63 }
  0x40   :  { %1658 = vmatprep.subr.msk.bf16.mxu0 %vm103_vm0, %v1406_v0 }
  0x4a   :  { %1521 = vmatmul.mubr.msk.bf16.vlgmr.msra.gmra.mrb[0].mxu0 %vm96_vm5, %v305_v9 }
  0x4b   :  { %1525 = vmatpush3.bf16.msra.mxu0 %v386_v10  ;;  %1526 = vmatprep.mubr.msk.bf16.mxu0 %vm96_vm5, %v373_v11 }
  0x4c   :  { %1659 = vmatprep.subr.msk.bf16.mxu0 %vm103_vm0, %v1409_v12 }
  0x56   :  { %1527 = vmatmul.mubr.msk.bf16.vlgmr.msra.gmra.mrb[0].mxu0 %vm96_vm5, %v376_v29 }
  0x57   :  { %1531 = vmatpush3.bf16.msra.mxu0 %v465_v30  ;;  %1532 = vmatprep.mubr.msk.bf16.mxu0 %vm96_vm5, %v448_v32 }
  0x58   :  { %1660 = vmatprep.subr.msk.bf16.mxu0 %vm103_vm0, %v1412_v22 }
  0x62   :  { %1533 = vmatmul.mubr.msk.bf16.vlgmr.msra.gmra.mrb[0].mxu0 %vm96_vm5, %v455_v35 }
  0x63   :  { %1537 = vmatpush3.bf16.msra.mxu0 %v536_v36  ;;  %1538 = vmatprep.mubr.msk.bf16.mxu0 %vm96_vm5, %v1860_v46  ;;  %v1673_v36 = vld [vmem:[#allocation2 + $0x30] sm:$0xff]  }
  0x6e   :  { %1539 = vmatmul.mubr.msk.bf16.vlgmr.msra.gmra.mrb[0].mxu0 %vm96_vm5, %v1863_v47 }
 0x141   :  { %v1540_v42 = vpop.f32.mrb[0].mxu0 }
 0x142   :  { %v597_v43 = vadd.f32 %v1540_v42, %v594_v41  ;;  %v572_v44 = vpop.f32.mrb[1].mxu0 }
 0x143   :  { %v595_v45 = vadd.f32 %v594_v41, %v572_v44  ;;  %v1541_v46 = vpop.f32.mrb[2].mxu0 }
 0x144   :  { %v598_v47 = vadd.f32 %v1541_v46, %v594_v41  ;;  %v575_v48 = vpop.f32.mrb[3].mxu0  ;;  %v601_v50 = vmax.f32 %v597_v43, 0.0 }
 0x145   :  { %v596_v49 = vadd.f32 %v594_v41, %v575_v48  ;;  %v599_v52 = vmax.f32 %v595_v45, 0.0  ;;  %v1674_v45 = vld [vmem:[#allocation2 + $0x38] sm:$0xff]  }
 0x146   :  { %v602_v51 = vmax.f32 %v598_v47, 0.0 }
 0x147   :  { %v600_v53 = vmax.f32 %v596_v49, 0.0  ;;  %v1675_v49 = vld [vmem:[#allocation2 + $0x40] sm:$0xff]  }
 0x148   :  { %v604_v54 = vpack.c.bf16 %v602_v51, %v601_v50 }
 0x149   :  { %v603_v55 = vpack.c.bf16 %v600_v53, %v599_v52 }
 0x14a   :  { %v614_v56 = vshrl.u32 %v604_v54, 16  ;;  %v617_v57 = vshll.u32 %v604_v54, 16 }
 0x14b   :  { %v606_v58 = vshrl.u32 %v603_v55, 16  ;;  %v609_v59 = vshll.u32 %v603_v55, 16 }
 0x14c   :  { %v616_v60 = vrot.slane %v614_v56, 6  ;;  %v619_v61 = vrot.slane %v617_v57, 7 }
 0x14d   :  { %v608_v62 = vrot.slane %v606_v58, 6  ;;  %v611_v63 = vrot.slane %v609_v59, 7  ;;  %v1676_v58 = vld [vmem:[#allocation2 + $0x48] sm:$0xff]  }
 0x14e   :  { %v620_v0 = vor.u32 %v619_v61, %v616_v60  ;;  %v1677_v61 = vld [vmem:[#allocation2 + $0x50] sm:$0xff]  }
 0x14f   :  { %v612_v1 = vor.u32 %v611_v63, %v608_v62 }
 0x150   :  { %v1940_v2 = vsel %vm1798_vm3, 0, %v620_v0  ;;  %v1944_v3 = vsel %vm1798_vm3, %v620_v0, 0 }
 0x151   :  { %v1948_v4 = vsel %vm1798_vm3, 0, %v612_v1  ;;  %v1952_v5 = vsel %vm1798_vm3, %v612_v1, 0  ;;  %v1955_v6 = vshll.u32 %v1940_v2, 16  ;;  %v1964_v9 = vshrl.u32 %v1940_v2, 16 }
 0x152   :  { %v1958_v7 = vshll.u32 %v1948_v4, 16  ;;  %v1961_v8 = vshll.u32 %v1952_v5, 16  ;;  %v1968_v11 = vshll.u32 %v1944_v3, 16  ;;  %v1971_v15 = vshrl.u32 %v1948_v4, 16 }
 0x153   :  { %v648_v10 = vrot.slane %v1955_v6, 1  ;;  %v1145_v29 = vrot.slane %v1948_v4, 3  ;;  %v1146_v30 = vrot.slane %v1952_v5, 3  ;;  %v1148_v32 = vrot.slane %v1940_v2, 3 }
 0x154   :  { %v636_v12 = vrot.slane %v1958_v7, 1  ;;  %v641_v16 = vrot.slane %v1961_v8, 1  ;;  %v653_v17 = vrot.slane %v1968_v11, 1  ;;  %v1149_v22 = vrot.slane %v1944_v3, 3 }
 0x155   :  { %v649_v13 = vor.u32 %v648_v10, %v1964_v9  ;;  %v1989_v23 = vsel %vm520_vm7, %v1145_v29, %v1146_v30  ;;  %v797_v25 = vrot.slane %v1948_v4, 1  ;;  %v798_v26 = vrot.slane %v1952_v5, 1 }
 0x156   :  { %v637_v14 = vor.u32 %v636_v12, %v1971_v15  ;;  %v1992_v24 = vsel %vm520_vm7, %v1148_v32, %v1149_v22  ;;  %v882_v35 = vshrl.u32 %v1952_v5, 16  ;;  %v879_v27 = vrot.slane %v1971_v15, 1 }
 0x157   :  { %v654_v20 = vsel %vm69_vm4, %v649_v13, %v653_v17  ;;  %v799_v34 = vsel %vm216_vm6, %v797_v25, %v798_v26  ;;  %v880_v28 = vrot.slane %v1958_v7, 2  ;;  %v885_v39 = vrot.slane %v1961_v8, 2  ;;  %v1678_v13 = vld [vmem:[#allocation2 + $0x58] sm:$0xff]  }
 0x158   :  { %v642_v18 = vsel %vm69_vm4, %v637_v14, %v641_v16  ;;  %v800_v41 = vrot.slane %v1940_v2, 1  ;;  %v801_v42 = vrot.slane %v1944_v3, 1  ;;  %v891_v47 = vshrl.u32 %v1944_v3, 16 }
 0x159   :  { %1546 = vmatprep.mubr.msk.bf16.mxu1 %vm672_vm11, %v642_v18  ;;  %v881_v43 = vor.u32 %v880_v28, %v879_v27  ;;  %v888_v50 = vrot.slane %v1964_v9, 1  ;;  %v889_v51 = vrot.slane %v1955_v6, 2  ;;  %v894_v53 = vrot.slane %v1968_v11, 2 }
 0x15a   :  { %1547 = vmatmul.mubr.msk.bf16.vlgmr.msra.gmra.mrb[0].mxu1 %vm672_vm11, %v654_v20  ;;  %v802_v46 = vsel %vm216_vm6, %v800_v41, %v801_v42  ;;  %v893_v52 = vrot.slane %v891_v47, 1  ;;  %v973_v56 = vrot.slane %v1948_v4, 2  ;;  %v974_v57 = vrot.slane %v1952_v5, 2 }
 0x15b   :  { %1551 = vmatpush3.bf16.msra.mxu1 %v1669_v31  ;;  %1554 = vmatprep.mubr.msk.bf16.mxu1 %vm672_vm11, %v1948_v4  ;;  %v884_v31 = vrot.slane %v882_v35, 1  ;;  %v890_v54 = vor.u32 %v889_v51, %v888_v50  ;;  %v1055_v62 = vrot.slane %v1971_v15, 2  ;;  %v1056_v63 = vrot.slane %v1958_v7, 3  ;;  %v1679_v7 = vld [vmem:[#allocation2 + $0x60] sm:$0xff]  }
 0x15c   :  { %1552 = vmatprep.subr.bf16.mxu1 %v1670_v19  ;;  %v895_v55 = vor.u32 %v894_v53, %v893_v52  ;;  %v975_v60 = vsel %vm370_vm9, %v973_v56, %v974_v57  ;;  %v1058_v0 = vrot.slane %v882_v35, 2  ;;  %v1059_v1 = vrot.slane %v1961_v8, 3 }
 0x15d   :  { %v886_v44 = vor.u32 %v885_v39, %v884_v31  ;;  %v976_v4 = vrot.slane %v1940_v2, 2  ;;  %v977_v5 = vrot.slane %v1944_v3, 2  ;;  %v1057_v10 = vor.u32 %v1056_v63, %v1055_v62 }
 0x15e   :  { %v896_v59 = vsel %vm287_vm8, %v890_v54, %v895_v55  ;;  %v1060_v12 = vor.u32 %v1059_v1, %v1058_v0  ;;  %v1062_v8 = vrot.slane %v1964_v9, 2  ;;  %v1065_v16 = vrot.slane %v891_v47, 2  ;;  %v1682_v9 = vld [vmem:[%s2075_s3 + $0x8] sm:$0xff]  }
 0x15f   :  { %1553 = vmatpush3.bf16.msra.mxu1 %v1670_v19  ;;  %v887_v48 = vsel %vm287_vm8, %v881_v43, %v886_v44  ;;  %v978_v14 = vsel %vm370_vm9, %v976_v4, %v977_v5  ;;  %v1066_v3 = vrot.slane %v1968_v11, 3  ;;  %v1680_v19 = vld [vmem:[#allocation2 + $0x68] sm:$0xff]   ;;  %v1229_v11 = vsub.s32 1, %v1929_v38 }
 0x160   :  { %1558 = vmatprep.subr.bf16.mxu1 %v1671_v21  ;;  %v1061_v15 = vsel %vm441_vm10, %v1057_v10, %v1060_v12  ;;  %v1341_v31 = vrot.slane %v1935_v40, 4  ;;  %v1247_v39 = vsub.s32 2, %v1929_v38  ;;  %v1322_v42 = vsub.s32 3, %v1929_v38 }
 0x161   :  { %v1067_v18 = vor.u32 %v1066_v3, %v1065_v16  ;;  %v1354_v63 = vand.u32 127, %v591_v37 }
 0x162   :  { %1661 = vpush %v1341_v31  ;;  %v1248_v41 = vrot.slane %v1935_v40, %v1247_v39 }
 0x163   :  { %v1359_v0 = vadd.s32 4294967288, %v1354_v63  ;;  %v1357_v10 = vsub.s32 %v1354_v63, %v1929_v38 }
 0x166   :  { %1555 = vmatmul.mubr.msk.bf16.vlgmr.msra.gmra.mrb[0].mxu1 %vm672_vm11, %v1940_v2  ;;  %v1063_v2 = vrot.slane %v1955_v6, 3  ;;  %v1681_v6 = vld [vmem:[%s2075_s3] sm:$0xff]  }
 0x167   :  { %1559 = vmatpush3.bf16.msra.mxu1 %v1671_v21  ;;  %1562 = vmatprep.mubr.msk.bf16.mxu1 %vm672_vm11, %v799_v34  ;;  %v1230_v21 = vrot.slane %v1935_v40, %v1229_v11 }
 0x168   :  { %1560 = vmatprep.subr.bf16.mxu1 %v1672_v33  ;;  %v1064_v17 = vor.u32 %v1063_v2, %v1062_v8  ;;  %1598 = vmatprep.subr.bf16.mxu0 %v1681_v6 }
 0x169   :  { %1599 = vmatpush3.bf16.msra.mxu0 %v1681_v6 }
 0x16a   :  { %v1068_v20 = vsel %vm441_vm10, %v1064_v17, %v1067_v18  ;;  %1600 = vmatprep.subr.bf16.mxu0 %v1682_v9 }
 0x16b   :  { %1561 = vmatpush3.bf16.msra.mxu1 %v1672_v33 }
 0x16c   :  { %1566 = vmatprep.subr.bf16.mxu1 %v1673_v36 }
 0x16d   :  { %1601 = vmatpush3.bf16.msra.mxu0 %v1682_v9 }
 0x172   :  { %1563 = vmatmul.mubr.msk.bf16.vlgmr.msra.gmra.mrb[0].mxu1 %vm672_vm11, %v802_v46  ;;  %v1323_v46 = vrot.slane %v1935_v40, %v1322_v42 }
 0x173   :  { %1567 = vmatpush3.bf16.msra.mxu1 %v1673_v36  ;;  %1570 = vmatprep.mubr.msk.bf16.mxu1 %vm672_vm11, %v887_v48 }
 0x174   :  { %1568 = vmatprep.subr.bf16.mxu1 %v1674_v45 }
 0x177   :  { %1569 = vmatpush3.bf16.msra.mxu1 %v1674_v45 }
 0x178   :  { %1574 = vmatprep.subr.bf16.mxu1 %v1675_v49 }
 0x17e   :  { %1571 = vmatmul.mubr.msk.bf16.vlgmr.msra.gmra.mrb[0].mxu1 %vm672_vm11, %v896_v59 }
 0x17f   :  { %1575 = vmatpush3.bf16.msra.mxu1 %v1675_v49  ;;  %1578 = vmatprep.mubr.msk.bf16.mxu1 %vm672_vm11, %v975_v60 }
 0x180   :  { %1576 = vmatprep.subr.bf16.mxu1 %v1676_v58 }
 0x183   :  { %1577 = vmatpush3.bf16.msra.mxu1 %v1676_v58 }
 0x184   :  { %1582 = vmatprep.subr.bf16.mxu1 %v1677_v61 }
 0x18a   :  { %1579 = vmatmul.mubr.msk.bf16.vlgmr.msra.gmra.mrb[0].mxu1 %vm672_vm11, %v978_v14 }
 0x18b   :  { %1583 = vmatpush3.bf16.msra.mxu1 %v1677_v61  ;;  %1586 = vmatprep.mubr.msk.bf16.mxu1 %vm672_vm11, %v1061_v15 }
 0x18c   :  { %1584 = vmatprep.subr.bf16.mxu1 %v1678_v13 }
 0x18f   :  { %1585 = vmatpush3.bf16.msra.mxu1 %v1678_v13  ;;  %v1362_v13 = vsub.s32 %v1359_v0, %v1929_v38 }
 0x190   :  { %1590 = vmatprep.subr.bf16.mxu1 %v1679_v7 }
 0x193   :  { %s1662_s3 = spop %1661 }
 0x194   :  { %v1343_v1 = vstv %s1662_s3 }
 0x196   :  { %1587 = vmatmul.mubr.msk.bf16.vlgmr.msra.gmra.mrb[0].mxu1 %vm672_vm11, %v1068_v20 }
 0x197   :  { %1591 = vmatpush3.bf16.msra.mxu1 %v1679_v7  ;;  %1594 = vmatprep.mubr.msk.bf16.mxu1 %vm672_vm11, %v1989_v23 }
 0x198   :  { %1592 = vmatprep.subr.bf16.mxu1 %v1680_v19 }
 0x19b   :  { %1593 = vmatpush3.bf16.msra.mxu1 %v1680_v19 }
 0x1a2   :  { %1595 = vmatmul.mubr.msk.bf16.vlgmr.msra.gmra.mrb[0].mxu1 %vm672_vm11, %v1992_v24 }
 0x275   :  { %v1596_v29 = vpop.f32.mrb[0].mxu1 }
 0x276   :  { %v1233_v30 = vadd.f32 %v1596_v29, %v1230_v21  ;;  %v1208_v32 = vpop.f32.mrb[1].mxu1 }
 0x277   :  { %v1231_v22 = vadd.f32 %v1230_v21, %v1208_v32  ;;  %v1597_v23 = vpop.f32.mrb[2].mxu1 }
 0x278   :  { %v1234_v24 = vadd.f32 %v1597_v23, %v1230_v21  ;;  %v1211_v25 = vpop.f32.mrb[3].mxu1  ;;  %v1237_v33 = vmax.f32 %v1233_v30, 0.0 }
 0x279   :  { %v1232_v26 = vadd.f32 %v1230_v21, %v1211_v25  ;;  %v1235_v35 = vmax.f32 %v1231_v22, 0.0 }
 0x27a   :  { %v1238_v34 = vmax.f32 %v1234_v24, 0.0 }
 0x27b   :  { %v1236_v36 = vmax.f32 %v1232_v26, 0.0 }
 0x27c   :  { %v1240_v27 = vpack.c.bf16 %v1238_v34, %v1237_v33 }
 0x27d   :  { %v1239_v28 = vpack.c.bf16 %v1236_v36, %v1235_v35 }
 0x27f   :  { %1602 = vmatprep.mubr.msk.bf16.mxu0 %vm672_vm11, %v1239_v28 }
 0x280   :  { %1603 = vmatmul.mubr.msk.bf16.vlgmr.msra.gmra.mrb[4].mxu0 %vm672_vm11, %v1240_v27 }
 0x353   :  { %v1604_v43 = vpop.f32.mrb[4].mxu0 }
 0x354   :  { %v1310_v44 = vadd.f32 %v1604_v43, %v1248_v41  ;;  %v1301_v45 = vpop.f32.mrb[5].mxu0 }
 0x355   :  { %v1302_v47 = vadd.f32 %v1301_v45, %v1248_v41  ;;  %v1605_v48 = vpop.f32.mrb[6].mxu0 }
 0x356   :  { %v1318_v49 = vmax.f32 %v1310_v44, 0.0  ;;  %v1313_v50 = vadd.f32 %v1605_v48, %v1248_v41  ;;  %v1304_v51 = vpop.f32.mrb[7].mxu0 }
 0x357   :  { %v1316_v52 = vmax.f32 %v1302_v47, 0.0  ;;  %v1305_v53 = vadd.f32 %v1304_v51, %v1248_v41 }
 0x358   :  { %v1319_v54 = vmax.f32 %v1313_v50, 0.0  ;;  %v1326_v55 = vmul.f32 %v1323_v46, %v1318_v49 }
 0x359   :  { %v1317_v56 = vmax.f32 %v1305_v53, 0.0  ;;  %v1324_v57 = vmul.f32 %v1323_v46, %v1316_v52 }
 0x35a   :  { %v1334_v58 = vsel %vm672_vm11, %v1326_v55, 0.0  ;;  %v1327_v59 = vmul.f32 %v1323_v46, %v1319_v54 }
 0x35b   :  { %1335 = vadd.xlane.f32.xlu1 %v1334_v58  ;;  %v1328_v60 = vsel %vm672_vm11, %v1324_v57, 0.0  ;;  %v1325_v61 = vmul.f32 %v1323_v46, %v1317_v56 }
 0x35c   :  { %1329 = vadd.xlane.f32.xlu0 %v1328_v60  ;;  %v1337_v40 = vsel %vm672_vm11, %v1327_v59, 0.0 }
 0x35d   :  { %v1331_v62 = vsel %vm672_vm11, %v1325_v61, 0.0 }
 0x35f   :  { %1338 = vadd.xlane.f32.xlu1 %v1337_v40 }
 0x360   :  { %1332 = vadd.xlane.f32.xlu0 %v1331_v62 }
 0x3e8   :  { %v1336_v4 = vpop.xlane.xlu1 %1335 }
 0x3e9   :  { %v1330_v5 = vpop.xlane.xlu0 %1329  ;;  %v1347_v12 = vadd.f32 %v1343_v1, %v1336_v4 }
 0x3ea   :  { %v1345_v14 = vadd.f32 %v1343_v1, %v1330_v5 }
 0x3eb   :  { %v1369_v16 = vrot.slane %v1347_v12, %v1357_v10 }
 0x3ec   :  { %v1339_v15 = vpop.xlane.xlu1 %1338  ;;  %v1358_v37 = vrot.slane %v1345_v14, %v1357_v10 }
 0x3ed   :  { %v1348_v7 = vadd.f32 %v1343_v1, %v1339_v15  ;;  %v1333_v8 = vpop.xlane.xlu0 %1332 }
 0x3ee   :  { %v1346_v2 = vadd.f32 %v1343_v1, %v1333_v8 }
 0x3ef   :  { %v1373_v3 = vrot.slane %v1348_v7, %v1362_v13 }
 0x3f0   :  { %v1363_v17 = vrot.slane %v1346_v2, %v1362_v13 }
 0x3f1   :  { %v1374_v18 = vsel %vm1364_vm12, %v1373_v3, %v1369_v16 }
 0x3f2   :  { %v1365_v19 = vsel %vm1364_vm12, %v1363_v17, %v1358_v37 }
 0x3f3   :  { %v1376_v20 = vsel %vm1375_vm13, %v1374_v18, %v1365_v19 }
 0x3f4   :  { %1379 = vst.msk [vmem:[#allocation5] sm:$0x3] %vm1378_vm14, %v1376_v20 }
 0x3f5   :  { %1716 = shalt.err (!%p1713_p12)
}
 0x3f6   :  { %s1717_s11 = scalar_lea.hbm %s2077_s5, 32 }
 0x3f7   :  { %p1718_p13 = scmp.ne.s32.totalorder %s2077_s5, %s1717_s11  ;;  %p1721_p0 = scmp.lt.u32.totalorder %s1717_s11, %s2077_s5 }
 0x3f9   :  { %p1723_p1 = pnand %p1721_p0, %p1718_p13 }
 0x3fb   :  { %1726 = shalt.err (!%p1723_p1)
}
 0x3fc   :  { %1389 = dma.vmem_to_hbm [thread:$0]  %s1387_s7, 32, %s2077_s5, [#allocation4]  }
 0x3fd   :  { %1729 = dma.done.wait [#allocation4], 32  }
 0x3fe   :  { %1730 = vsyncadd [#allocation4], 4294967264 }
 0x3ff   :  { %1393 = vsyncpa [#allocation3], 1 }
 0x400   :  { %1394 = vsyncpa [#allocation4], 1 }

</bundles_post_ra>
